<compile_context>
chip_gen: v6e
topology: v6e:2x2x1
jax: 0.10.0
libtpu: 0.0.40
codegen_flags: <defaults>
</compile_context>

<pallas_src>
import functools

import jax
import jax.numpy as jnp
from jax import lax
from jax.experimental import pallas as pl
from jax.experimental.pallas import tpu as pltpu

# Safe on every generation (v5e/v6e: 128 MiB physical, v7x: 64 MiB physical).
_VMEM_LIMIT = 48 * 1024 * 1024


def _round_up(x, m):
    return ((x + m - 1) // m) * m


def _pick_tile(dim_padded, ladder=(512, 256, 128)):
    for t in ladder:
        if dim_padded % t == 0:
            return t
    return dim_padded  # unreachable: dim_padded is always a multiple of 128


# ---------------------------------------------------------------------------
# Tiled matmul + bias with bf16 MXU operands and f32 accumulation:
#   out_f32 = x_bf16 @ w_bf16 + b_f32        (x: (M,K), w: (K,N), b: (1,N))
# ---------------------------------------------------------------------------
def _matmul_bias_kernel(x_ref, w_ref, b_ref, o_ref, acc_ref):
    @pl.when(pl.program_id(2) == 0)
    def _():
        acc_ref[...] = jnp.zeros_like(acc_ref)

    acc_ref[...] += jnp.dot(x_ref[...], w_ref[...],
                            preferred_element_type=jnp.float32)

    @pl.when(pl.program_id(2) == pl.num_programs(2) - 1)
    def _():
        o_ref[...] = (acc_ref[...] + b_ref[...]).astype(o_ref.dtype)


def matmul_bias(x, w, b):
    """x:(M,K) @ w:(K,N) + b:(1,N) -> f32 (M,N).  Pads all dims to 128."""
    M, K = x.shape
    _, N = w.shape
    Mp, Kp, Np = _round_up(M, 128), _round_up(K, 128), _round_up(N, 128)
    if (Mp, Kp) != (M, K):
        x = jnp.pad(x, ((0, Mp - M), (0, Kp - K)))
    if (Kp, Np) != (K, N):
        w = jnp.pad(w, ((0, Kp - K), (0, Np - N)))
    if Np != N:
        b = jnp.pad(b, ((0, 0), (0, Np - N)))
    x = x.astype(jnp.bfloat16)
    w = w.astype(jnp.bfloat16)
    b = b.astype(jnp.float32)

    tm, tn, tk = _pick_tile(Mp), _pick_tile(Np), _pick_tile(Kp)
    out = pl.pallas_call(
        _matmul_bias_kernel,
        out_shape=jax.ShapeDtypeStruct((Mp, Np), jnp.float32),
        grid_spec=pltpu.PrefetchScalarGridSpec(
            num_scalar_prefetch=0,
            grid=(Mp // tm, Np // tn, Kp // tk),
            in_specs=[
                pl.BlockSpec((tm, tk), lambda i, j, k: (i, k)),
                pl.BlockSpec((tk, tn), lambda i, j, k: (k, j)),
                pl.BlockSpec((1, tn), lambda i, j, k: (0, j)),
            ],
            out_specs=pl.BlockSpec((tm, tn), lambda i, j, k: (i, j)),
            scratch_shapes=[pltpu.VMEM((tm, tn), jnp.float32)],
        ),
        compiler_params=pltpu.CompilerParams(
            dimension_semantics=("parallel", "parallel", "arbitrary"),
            vmem_limit_bytes=_VMEM_LIMIT),
    )(x, w, b)
    if (Mp, Np) != (M, N):
        out = out[:M, :N]
    return out


# ---------------------------------------------------------------------------
# Sequential GRU recurrence, chunked over time and tiled (parallel) over batch.
# gi arrives time-major (T, B, 3H) so each step is a dense slab load; hidden
# states leave time-major (T, B, H) as dense slab stores.  Only h @ W_hh runs
# inside the loop (bf16 MXU, f32 accumulate); gates are f32.
# ---------------------------------------------------------------------------
def _gru_recurrence_kernel(gi_ref, whh_ref, bhn_ref, hseq_ref, h_ref,
                           *, hidden_size, chunk):
    H = hidden_size

    @pl.when(pl.program_id(1) == 0)
    def _():
        h_ref[...] = jnp.zeros_like(h_ref)           # PyTorch default h0 = 0

    whh = whh_ref[...]                               # (H, 3H) bf16, hoisted
    bhn = bhn_ref[...]                               # (1, H)  f32,  hoisted
    h = h_ref[...]                                   # (tb, H) f32

    for tt in range(chunk):                          # static unroll over chunk
        gi_t = gi_ref[tt]                            # (tb, 3H) dense slab load
        gh = jnp.dot(h.astype(jnp.bfloat16), whh,
                     preferred_element_type=jnp.float32)      # (tb, 3H) f32
        # PyTorch GRU gate order along 3H: r, z, n.  b_hh(r,z) is pre-folded
        # into gi; b_hn stays inside r * (W_hn h + b_hn).
        rz = jax.nn.sigmoid(gi_t[:, :2 * H] + gh[:, :2 * H])
        r = rz[:, :H]
        z = rz[:, H:]
        n = jnp.tanh(gi_t[:, 2 * H:] + r * (gh[:, 2 * H:] + bhn))
        h = (1.0 - z) * n + z * h
        hseq_ref[tt] = h                             # dense slab store

    h_ref[...] = h


def _pick_batch_tile(B):
    half = B // 2
    if half >= 8 and B % half == 0 and half % 8 == 0:
        return half            # two tiles -> grid can shard across both TCs
    return B


def _pick_chunk(T, tb, H, budget=40 * 1024 * 1024):
    for c in (32, 16, 8, 4, 2, 1):
        if T % c == 0:
            need = (2 * tb * c * (3 * H + H) * 4      # gi + hseq blocks, 2-buf
                    + 2 * H * 3 * H * 2               # W_hh bf16, 2-buf
                    + tb * H * 4)                     # carried h scratch
            if need <= budget:
                return c
    return 1


def gru_hidden_sequence(gi_tm, w_hh_bf16, b_hn):
    T, B, H3 = gi_tm.shape
    H = H3 // 3
    tb = _pick_batch_tile(B)
    TT = _pick_chunk(T, tb, H)
    kernel = functools.partial(_gru_recurrence_kernel, hidden_size=H, chunk=TT)
    return pl.pallas_call(
        kernel,
        out_shape=jax.ShapeDtypeStruct((T, B, H), jnp.float32),
        grid_spec=pltpu.PrefetchScalarGridSpec(
            num_scalar_prefetch=0,
            grid=(B // tb, T // TT),
            in_specs=[
                pl.BlockSpec((TT, tb, H3), lambda b, t: (t, b, 0)),  # gi chunk
                pl.BlockSpec((H, H3), lambda b, t: (0, 0)),          # W_hh^T
                pl.BlockSpec((1, H), lambda b, t: (0, 0)),           # b_hn
            ],
            out_specs=pl.BlockSpec((TT, tb, H), lambda b, t: (t, b, 0)),
            scratch_shapes=[pltpu.VMEM((tb, H), jnp.float32)],       # carried h
        ),
        compiler_params=pltpu.CompilerParams(
            dimension_semantics=("parallel", "arbitrary"),
            vmem_limit_bytes=_VMEM_LIMIT),
    )(gi_tm, w_hh_bf16, b_hn)


# ---------------------------------------------------------------------------
# Full forward: Embedding -> GRU -> Linear.   captions (B, T) -> (B, T, V).
# ---------------------------------------------------------------------------
def text_forward(captions, params):
    B, T = captions.shape
    E = params["w_ih"].shape[0]
    H = params["w_hh"].shape[0]
    V = params["w_fc"].shape[1]

    # Embedding lookup, gathered time-major (index-order trick, no transpose
    # of the embedded data) so the recurrence sees dense slab loads/stores.
    emb_tm = jnp.take(params["embedding"], captions.T, axis=0)     # (T, B, E)

    # Fold b_hh into the input-projection bias for the r/z lanes.
    b_gi = jnp.concatenate(
        [params["b_ih"][:, :2 * H] + params["b_hh"][:, :2 * H],
         params["b_ih"][:, 2 * H:]], axis=1)
    b_hn = params["b_hh"][:, 2 * H:]

    # (1) Input projection for ALL timesteps at once: (T*B, E) @ (E, 3H).
    gi = matmul_bias(emb_tm.reshape(T * B, E), params["w_ih"], b_gi)
    gi = gi.reshape(T, B, 3 * H)

    # (2) Sequential recurrence (only h @ W_hh per timestep), time-major I/O.
    h_seq_tm = gru_hidden_sequence(gi, params["w_hh"].astype(jnp.bfloat16),
                                   b_hn)                           # (T, B, H)

    # (3) Output projection for ALL timesteps at once; transpose the small
    # hidden sequence (not the big logits) so the output is batch-first.
    h_seq = jnp.transpose(h_seq_tm, (1, 0, 2)).reshape(B * T, H)
    logits = matmul_bias(h_seq, params["w_fc"], params["b_fc"])
    return logits.reshape(B, T, V)


def init_params(key, vocab_size, embed_dim, hidden_size):
    ks = jax.random.split(key, 7)
    s = 0.1
    return {
        "embedding": s * jax.random.normal(ks[0], (vocab_size, embed_dim), jnp.float32),
        # Stored transposed relative to PyTorch (so kernels do x @ W).
        "w_ih": s * jax.random.normal(ks[1], (embed_dim, 3 * hidden_size), jnp.float32),
        "w_hh": s * jax.random.normal(ks[2], (hidden_size, 3 * hidden_size), jnp.float32),
        "b_ih": s * jax.random.normal(ks[3], (1, 3 * hidden_size), jnp.float32),
        "b_hh": s * jax.random.normal(ks[4], (1, 3 * hidden_size), jnp.float32),
        "w_fc": s * jax.random.normal(ks[5], (hidden_size, vocab_size), jnp.float32),
        "b_fc": s * jax.random.normal(ks[6], (1, vocab_size), jnp.float32),
    }


def text_forward_ref(captions, params):
    """Pure f32 JAX reference (mirrors PyTorch GRU equations)."""
    H = params["w_hh"].shape[0]
    emb = jnp.take(params["embedding"], captions, axis=0)  # (B, T, E)
    x_tm = jnp.transpose(emb, (1, 0, 2))                   # (T, B, E)
    B = x_tm.shape[1]

    def step(h, x_t):
        gi = x_t @ params["w_ih"] + params["b_ih"]
        gh = h @ params["w_hh"] + params["b_hh"]
        r = jax.nn.sigmoid(gi[:, :H] + gh[:, :H])
        z = jax.nn.sigmoid(gi[:, H:2 * H] + gh[:, H:2 * H])
        n = jnp.tanh(gi[:, 2 * H:] + r * gh[:, 2 * H:])
        h_new = (1.0 - z) * n + z * h
        return h_new, h_new

    h0 = jnp.zeros((B, H), jnp.float32)
    _, hs = lax.scan(step, h0, x_tm)                       # (T, B, H)
    logits = hs @ params["w_fc"] + params["b_fc"]          # (T, B, V)
    return jnp.transpose(logits, (1, 0, 2))                # (B, T, V)


if __name__ == "__main__":
    B, T = 2, 8
    embed_dim, hidden_size, vocab_size = 32, 32, 64

    key = jax.random.PRNGKey(0)
    k_cap, k_par = jax.random.split(key)

    captions = jax.random.randint(k_cap, (B, T), 0, vocab_size, dtype=jnp.int32)
    params = init_params(k_par, vocab_size, embed_dim, hidden_size)

    out = jax.block_until_ready(text_forward(captions, params))
    ref = jax.block_until_ready(text_forward_ref(captions, params))

    assert out.shape == (B, T, vocab_size)
    # bf16 MXU operands -> loosened tolerance vs. the pure-f32 reference.
    max_err = float(jnp.max(jnp.abs(out - ref)))
    assert jnp.allclose(out, ref, atol=2e-2, rtol=2e-2), max_err
    print("KERNEL_OK")
</pallas_src>

<mosaic_0001>
module attributes {stable_mosaic.version = 11 : i64} {
  func.func @_matmul_bias_kernel(%arg0: i32, %arg1: i32, %arg2: i32, %arg3: memref<128x128xbf16, #tpu.memory_space<vmem>>, %arg4: memref<128x128xbf16, #tpu.memory_space<vmem>>, %arg5: memref<1x128xf32, #tpu.memory_space<vmem>>, %arg6: memref<128x128xf32, #tpu.memory_space<vmem>>, %arg7: memref<128x128xf32, #tpu.memory_space<vmem>>) attributes {dimension_semantics = [#tpu.dimension_semantics<parallel>, #tpu.dimension_semantics<parallel>, #tpu.dimension_semantics<arbitrary>], iteration_bounds = array<i64: 1, 1, 1>, scalar_prefetch = 0 : i64, scratch_operands = 1 : i64, tpu.core_type = #tpu.core_type<tc>, window_params = [{transform_indices = @transform_0, window_bounds = array<i64: 128, 128>}, {transform_indices = @transform_1, window_bounds = array<i64: 128, 128>}, {transform_indices = @transform_2, window_bounds = array<i64: 1, 128>}, {transform_indices = @transform_3, window_bounds = array<i64: 128, 128>}]} {
    %c0_i32 = arith.constant 0 : i32
    %0 = arith.cmpi eq, %arg2, %c0_i32 : i32
    %1 = arith.extui %0 : i1 to i32
    %c0_i32_0 = arith.constant 0 : i32
    %2 = arith.cmpi ne, %1, %c0_i32_0 : i32
    scf.if %2 {
      %cst_10 = arith.constant 0.000000e+00 : f32
      %12 = vector.broadcast %cst_10 : f32 to vector<128x128xf32>
      %c0_11 = arith.constant 0 : index
      %c0_12 = arith.constant 0 : index
      %13 = vector.load %arg7[%c0_11, %c0_12] : memref<128x128xf32, #tpu.memory_space<vmem>>, vector<128x128xf32>
      tpu.vector_store %arg7[%c0_11, %c0_12], %12 {strides = array<i32>} : memref<128x128xf32, #tpu.memory_space<vmem>>, vector<128x128xf32>,
    } else {
    }
    %c0 = arith.constant 0 : index
    %c0_1 = arith.constant 0 : index
    %3 = vector.load %arg7[%c0, %c0_1] : memref<128x128xf32, #tpu.memory_space<vmem>>, vector<128x128xf32>
    %c0_2 = arith.constant 0 : index
    %c0_3 = arith.constant 0 : index
    %4 = vector.load %arg3[%c0_2, %c0_3] : memref<128x128xbf16, #tpu.memory_space<vmem>>, vector<128x128xbf16>
    %c0_4 = arith.constant 0 : index
    %c0_5 = arith.constant 0 : index
    %5 = vector.load %arg4[%c0_4, %c0_5] : memref<128x128xbf16, #tpu.memory_space<vmem>>, vector<128x128xbf16>
    %cst = arith.constant dense<0.000000e+00> : vector<128x128xf32>
    %6 = tpu.matmul %4, %5, %cst {dimension_numbers = #tpu.dot_dimension_numbers<[1], [0], [0], [1], [0, 0, 1, 1], [], []>} : vector<128x128xbf16>, vector<128x128xbf16>, vector<128x128xf32> -> vector<128x128xf32>
    %7 = arith.addf %3, %6 : vector<128x128xf32>
    %c0_6 = arith.constant 0 : index
    %c0_7 = arith.constant 0 : index
    %8 = vector.load %arg7[%c0_6, %c0_7] : memref<128x128xf32, #tpu.memory_space<vmem>>, vector<128x128xf32>
    tpu.vector_store %arg7[%c0_6, %c0_7], %7 {strides = array<i32>} : memref<128x128xf32, #tpu.memory_space<vmem>>, vector<128x128xf32>,
    %c0_i32_8 = arith.constant 0 : i32
    %9 = arith.cmpi eq, %arg2, %c0_i32_8 : i32
    %10 = arith.extui %9 : i1 to i32
    %c0_i32_9 = arith.constant 0 : i32
    %11 = arith.cmpi ne, %10, %c0_i32_9 : i32
    scf.if %11 {
      %c0_10 = arith.constant 0 : index
      %c0_11 = arith.constant 0 : index
      %12 = vector.load %arg7[%c0_10, %c0_11] : memref<128x128xf32, #tpu.memory_space<vmem>>, vector<128x128xf32>
      %c0_12 = arith.constant 0 : index
      %c0_13 = arith.constant 0 : index
      %13 = vector.load %arg5[%c0_12, %c0_13] : memref<1x128xf32, #tpu.memory_space<vmem>>, vector<1x128xf32>
      %14 = vector.broadcast %13 : vector<1x128xf32> to vector<128x128xf32>
      %15 = arith.addf %12, %14 : vector<128x128xf32>
      %c0_14 = arith.constant 0 : index
      %c0_15 = arith.constant 0 : index
      %16 = vector.load %arg6[%c0_14, %c0_15] : memref<128x128xf32, #tpu.memory_space<vmem>>, vector<128x128xf32>
      tpu.vector_store %arg6[%c0_14, %c0_15], %15 {strides = array<i32>} : memref<128x128xf32, #tpu.memory_space<vmem>>, vector<128x128xf32>,
    } else {
    }
    return
  }
  func.func @transform_0(%arg0: i32, %arg1: i32, %arg2: i32) -> (i32, i32) {
    %c0_i32 = arith.constant 0 : i32
    return %arg0, %arg2 : i32, i32
  }
  func.func @transform_1(%arg0: i32, %arg1: i32, %arg2: i32) -> (i32, i32) {
    %c0_i32 = arith.constant 0 : i32
    return %arg2, %arg1 : i32, i32
  }
  func.func @transform_2(%arg0: i32, %arg1: i32, %arg2: i32) -> (i32, i32) {
    %c0_i32 = arith.constant 0 : i32
    %c0_i32_0 = arith.constant 0 : i32
    return %c0_i32, %arg1 : i32, i32
  }
  func.func @transform_3(%arg0: i32, %arg1: i32, %arg2: i32) -> (i32, i32) {
    %c0_i32 = arith.constant 0 : i32
    return %arg0, %arg1 : i32, i32
  }
}

</mosaic_0001>

<bundles_post_ra>
// kernel: tpu_custom_call.1
= control target key start
LH: loop header
LB: loop body
LE: loop exit
PB: predicated region body
PF: predicated region fallthrough
CT: control target
= control target key end

     0   :  { %8 = vsyncpa [#allocation4], 0  ;;  %s622_s0 = inlined_call_operand.hbm [shape: bf16[128,128], index: 0, kind: input, shape index: {}]   ;;  %s623_s1 = inlined_call_operand.hbm [shape: bf16[128,128], index: 1, kind: input, shape index: {}]   ;;  %s624_s2 = inlined_call_operand.vmem [shape: f32[1,128], index: 2, kind: input, shape index: {}]   ;;  %s625_s3 = inlined_call_operand.hbm [shape: f32[128,128], index: 3, kind: output, shape index: {}]  }
   0x1   :  { %9 = vsyncpa [#allocation7], 0 }
   0x2   :  { %10 = vsyncpa [#allocation5], 0  ;;  %s583_s12 = smov [#allocation3]  }
   0x3   :  { %s16_s13 = sshll.u32 %s583_s12, 4  ;;  %s17_s13 = int_to_ptr.vmem [resolvable:$true] %s16_s13 }
   0x4   :  { %s525_s14 = scalar_lea.vmem %s17_s13, 1024  ;;  %p530_p1 = scmp.lt.s32.totalorder %s17_s13, %s17_s13 }
   0x5   :  { %p526_p0 = scmp.ne.s32.totalorder %s17_s13, %s525_s14  ;;  %p531_p2 = scmp.lt.s32.totalorder %s525_s14, %s525_s14 }
   0x7   :  { %p532_p3 = por %p531_p2, %p530_p1 }
   0x9   :  { %p533_p4 = pnand %p532_p3, %p526_p0 }
   0xb   :  { %536 = shalt.err (!%p533_p4)
}
   0xc   :  { %s584_s15 = smov 64   ;;  %s585_s16 = smov 4  }
   0xd   :  { %22 = dma.hbm_to_vmem [thread:$0]  %s622_s0, 1024, %s17_s13, [#allocation4], %s584_s15, %s584_s15, %s585_s16  }
   0xe   :  { %s586_s19 = smov [#allocation6]  }
   0xf   :  { %s28_s20 = sshll.u32 %s586_s19, 4  ;;  %s29_s20 = int_to_ptr.vmem [resolvable:$true] %s28_s20 }
  0x10   :  { %s545_s21 = scalar_lea.vmem %s29_s20, 1024  ;;  %p550_p6 = scmp.lt.s32.totalorder %s29_s20, %s29_s20 }
  0x11   :  { %p546_p5 = scmp.ne.s32.totalorder %s29_s20, %s545_s21  ;;  %p551_p7 = scmp.lt.s32.totalorder %s545_s21, %s545_s21 }
  0x13   :  { %p552_p8 = por %p551_p7, %p550_p6 }
  0x15   :  { %p553_p9 = pnand %p552_p8, %p546_p5 }
  0x17   :  { %556 = shalt.err (!%p553_p9)
}
  0x18   :  { %34 = dma.hbm_to_vmem [thread:$0]  %s623_s1, 1024, %s29_s20, [#allocation7], %s584_s15, %s584_s15, %s585_s16  }
  0x19   :  { %577 = dma.done.wait [#allocation4], 1024  }
  0x1a   :  { %578 = vsyncadd [#allocation4], 4294966272 }
  0x1b   :  { %579 = dma.done.wait [#allocation7], 1024  }
  0x1c   :  { %580 = vsyncadd [#allocation7], 4294966272  ;;  %v501_v0 = vld [vmem:[#allocation6 + $0x38] sm:$0xff]   ;;  %v502_v1 = vld [vmem:[#allocation6 + $0x30] sm:$0xff]  }
  0x1d   :  { %446 = vmatprep.subr.bf16.mxu0 %v501_v0  ;;  %478 = vmatprep.subr.bf16.mxu1 %v501_v0  ;;  %v503_v2 = vld [vmem:[#allocation6 + $0x28] sm:$0xff]   ;;  %v504_v3 = vld [vmem:[#allocation6 + $0x20] sm:$0xff]   ;;  %v505_v6 = vld [vmem:[#allocation6 + $0x18] sm:$0xff]  }
  0x1e   :  { %447 = vmatpush3.bf16.msra.mxu0 %v501_v0  ;;  %486 = vmatpush3.bf16.msra.mxu1 %v501_v0  ;;  %v509_v4 = vld [vmem:[#allocation3] sm:$0xff]   ;;  %v506_v7 = vld [vmem:[#allocation6 + $0x10] sm:$0xff]   ;;  %v507_v8 = vld [vmem:[#allocation6 + $0x8] sm:$0xff]  }
  0x1f   :  { %448 = vmatprep.subr.bf16.mxu0 %v502_v1  ;;  %479 = vmatprep.subr.bf16.mxu1 %v502_v1  ;;  %v510_v5 = vld [vmem:[#allocation3 + $0x20] sm:$0xff]   ;;  %v511_v10 = vld [vmem:[#allocation3 + $0x8] sm:$0xff]   ;;  %v513_v12 = vld [vmem:[#allocation3 + $0x10] sm:$0xff]  }
  0x20   :  { %462 = vmatprep.mubr.bf16.mxu0 %v509_v4  ;;  %470 = vmatprep.mubr.bf16.mxu1 %v510_v5  ;;  %v508_v9 = vld [vmem:[#allocation6] sm:$0xff]   ;;  %v512_v11 = vld [vmem:[#allocation3 + $0x28] sm:$0xff]   ;;  %v514_v13 = vld [vmem:[#allocation3 + $0x30] sm:$0xff]  }
  0x21   :  { %v515_v14 = vld [vmem:[#allocation3 + $0x18] sm:$0xff]   ;;  %v429_v16 = vld [vmem:[%s624_s2] ss:$0 sm:$0xff]  ;;  %s587_s2 = smov [#allocation8]  }
  0x22   :  { %449 = vmatpush3.bf16.msra.mxu0 %v502_v1  ;;  %487 = vmatpush3.bf16.msra.mxu1 %v502_v1  ;;  %v516_v15 = vld [vmem:[#allocation3 + $0x38] sm:$0xff]   ;;  %s400_s24 = sshll.u32 %s587_s2, 4  ;;  %s401_s24 = int_to_ptr.vmem [resolvable:$true] %s400_s24 }
  0x23   :  { %450 = vmatprep.subr.bf16.mxu0 %v503_v2  ;;  %480 = vmatprep.subr.bf16.mxu1 %v503_v2  ;;  %s557_s25 = scalar_lea.vmem %s401_s24, 2048  ;;  %p562_p11 = scmp.lt.s32.totalorder %s401_s24, %s401_s24 }
  0x24   :  { %p558_p10 = scmp.ne.s32.totalorder %s401_s24, %s557_s25  ;;  %p563_p12 = scmp.lt.s32.totalorder %s557_s25, %s557_s25 }
  0x26   :  { %451 = vmatpush3.bf16.msra.mxu0 %v503_v2  ;;  %488 = vmatpush3.bf16.msra.mxu1 %v503_v2  ;;  %p564_p13 = por %p563_p12, %p562_p11 }
  0x27   :  { %452 = vmatprep.subr.bf16.mxu0 %v504_v3  ;;  %481 = vmatprep.subr.bf16.mxu1 %v504_v3 }
  0x28   :  { %p565_p0 = pnand %p564_p13, %p558_p10 }
  0x2a   :  { %453 = vmatpush3.bf16.msra.mxu0 %v504_v3  ;;  %489 = vmatpush3.bf16.msra.mxu1 %v504_v3 }
  0x2b   :  { %454 = vmatprep.subr.bf16.mxu0 %v505_v6  ;;  %482 = vmatprep.subr.bf16.mxu1 %v505_v6 }
  0x2e   :  { %455 = vmatpush3.bf16.msra.mxu0 %v505_v6  ;;  %490 = vmatpush3.bf16.msra.mxu1 %v505_v6 }
  0x2f   :  { %456 = vmatprep.subr.bf16.mxu0 %v506_v7  ;;  %483 = vmatprep.subr.bf16.mxu1 %v506_v7 }
  0x32   :  { %457 = vmatpush3.bf16.msra.mxu0 %v506_v7  ;;  %491 = vmatpush3.bf16.msra.mxu1 %v506_v7 }
  0x33   :  { %458 = vmatprep.subr.bf16.mxu0 %v507_v8  ;;  %484 = vmatprep.subr.bf16.mxu1 %v507_v8 }
  0x36   :  { %459 = vmatpush3.bf16.msra.mxu0 %v507_v8  ;;  %492 = vmatpush3.bf16.msra.mxu1 %v507_v8 }
  0x37   :  { %460 = vmatprep.subr.bf16.mxu0 %v508_v9  ;;  %485 = vmatprep.subr.bf16.mxu1 %v508_v9 }
  0x3a   :  { %461 = vmatpush3.bf16.msra.mxu0 %v508_v9  ;;  %493 = vmatpush3.bf16.msra.mxu1 %v508_v9 }
  0x3d   :  { %463 = vmatmul.mubr.bf16.vlgmr.msra.gmra.mxu0 %v511_v10  ;;  %471 = vmatmul.mubr.bf16.vlgmr.msra.gmra.mxu1 %v512_v11 }
  0x3e   :  { %466 = vmatprep.mubr.bf16.mxu0 %v513_v12  ;;  %474 = vmatprep.mubr.bf16.mxu1 %v514_v13 }
  0x45   :  { %467 = vmatmul.mubr.bf16.gmra.mxu0 %v515_v14  ;;  %475 = vmatmul.mubr.bf16.gmra.mxu1 %v516_v15 }
  0xfd   :  { %v464_v17 = vpop.f32.mrf.mxu0  ;;  %v472_v18 = vpop.f32.mrf.mxu1 }
  0xfe   :  { %v365_v19 = vadd.f32 %v464_v17, %v429_v16  ;;  %v373_v20 = vadd.f32 %v472_v18, %v429_v16 }
  0xff   :  { %v242_v21 = vpop.f32.mrf.mxu0  ;;  %v274_v22 = vpop.f32.mrf.mxu1 }
 0x100   :  { %381 = vst [vmem:[#allocation8 + $0x10] sm:$0xff] %v365_v19  ;;  %389 = vst [vmem:[#allocation8 + $0x50] sm:$0xff] %v373_v20  ;;  %v363_v23 = vadd.f32 %v429_v16, %v242_v21  ;;  %v371_v24 = vadd.f32 %v429_v16, %v274_v22 }
 0x101   :  { %v465_v25 = vpop.f32.mrf.mxu0  ;;  %v473_v26 = vpop.f32.mrf.mxu1 }
 0x102   :  { %379 = vst [vmem:[#allocation8] sm:$0xff] %v363_v23  ;;  %387 = vst [vmem:[#allocation8 + $0x40] sm:$0xff] %v371_v24  ;;  %v366_v27 = vadd.f32 %v465_v25, %v429_v16  ;;  %v374_v28 = vadd.f32 %v473_v26, %v429_v16 }
 0x103   :  { %v245_v29 = vpop.f32.mrf.mxu0  ;;  %v277_v30 = vpop.f32.mrf.mxu1 }
 0x104   :  { %382 = vst [vmem:[#allocation8 + $0x18] sm:$0xff] %v366_v27  ;;  %390 = vst [vmem:[#allocation8 + $0x58] sm:$0xff] %v374_v28  ;;  %v364_v31 = vadd.f32 %v429_v16, %v245_v29  ;;  %v372_v32 = vadd.f32 %v429_v16, %v277_v30 }
 0x105   :  { %v468_v33 = vpop.f32.mrf.mxu0  ;;  %v476_v34 = vpop.f32.mrf.mxu1 }
 0x106   :  { %380 = vst [vmem:[#allocation8 + $0x8] sm:$0xff] %v364_v31  ;;  %388 = vst [vmem:[#allocation8 + $0x48] sm:$0xff] %v372_v32  ;;  %v369_v35 = vadd.f32 %v468_v33, %v429_v16  ;;  %v377_v36 = vadd.f32 %v476_v34, %v429_v16 }
 0x107   :  { %v258_v37 = vpop.f32.mrf.mxu0  ;;  %v290_v38 = vpop.f32.mrf.mxu1 }
 0x108   :  { %385 = vst [vmem:[#allocation8 + $0x30] sm:$0xff] %v369_v35  ;;  %393 = vst [vmem:[#allocation8 + $0x70] sm:$0xff] %v377_v36  ;;  %v367_v39 = vadd.f32 %v429_v16, %v258_v37  ;;  %v375_v40 = vadd.f32 %v429_v16, %v290_v38 }
 0x109   :  { %v469_v41 = vpop.f32.mrf.mxu0  ;;  %v477_v42 = vpop.f32.mrf.mxu1 }
 0x10a   :  { %383 = vst [vmem:[#allocation8 + $0x20] sm:$0xff] %v367_v39  ;;  %391 = vst [vmem:[#allocation8 + $0x60] sm:$0xff] %v375_v40  ;;  %v370_v43 = vadd.f32 %v469_v41, %v429_v16  ;;  %v378_v44 = vadd.f32 %v477_v42, %v429_v16 }
 0x10b   :  { %v261_v45 = vpop.f32.mrf.mxu0  ;;  %v293_v46 = vpop.f32.mrf.mxu1 }
 0x10c   :  { %386 = vst [vmem:[#allocation8 + $0x38] sm:$0xff] %v370_v43  ;;  %394 = vst [vmem:[#allocation8 + $0x78] sm:$0xff] %v378_v44  ;;  %v368_v47 = vadd.f32 %v429_v16, %v261_v45  ;;  %v376_v48 = vadd.f32 %v429_v16, %v293_v46 }
 0x10e   :  { %384 = vst [vmem:[#allocation8 + $0x28] sm:$0xff] %v368_v47  ;;  %392 = vst [vmem:[#allocation8 + $0x68] sm:$0xff] %v376_v48 }
 0x10f   :  { %568 = shalt.err (!%p565_p0)
}
 0x110   :  { %s588_s26 = smov 128   ;;  %s589_s27 = smov 8  }
 0x111   :  { %406 = dma.vmem_to_hbm [thread:$0]  %s401_s24, 2048, %s625_s3, [#allocation5], %s588_s26, %s588_s26, %s589_s27  }
 0x112   :  { %581 = dma.done.wait [#allocation5], 2048  }
 0x113   :  { %582 = vsyncadd [#allocation5], 4294965248 }
 0x114   :  { %410 = vsyncpa [#allocation4], 1 }
 0x115   :  { %411 = vsyncpa [#allocation7], 1 }
 0x116   :  { %412 = vsyncpa [#allocation5], 1 }

</bundles_post_ra>
